<compile_context>
chip_gen: v7x
topology: tpu7x:2x2x1
jax: 0.10.0
libtpu: 0.0.40
codegen_flags: <defaults>
</compile_context>

<pallas_src>
import functools

import jax
import jax.numpy as jnp
from jax.experimental import pallas as pl
from jax.experimental.pallas import tpu as pltpu

LANE = 128       # TPU lane width
TM_MAX = 2048    # rows per grid step: 2048*128*4B = 1 MiB per f32 input per step


def _round_up(x, m):
    return ((x + m - 1) // m) * m


def _sublane_granule(dtype):
    # f32 -> 8 rows, bf16 -> 16, int8/uint8/bool -> 32 (sub-32-bit packing).
    return max(8, 32 // max(1, jnp.dtype(dtype).itemsize))


def _dice_kernel(pr_ref, gt_ref, out_ref, *, tm, steps, rows, needs_mask):
    """Accumulates partial sums of pr*gt and pr+gt into the resident (1,2,8,128)
    output block for this core. Rows beyond `rows` (edge-padded / duplicated
    blocks) are masked to zero so they contribute nothing."""
    i = pl.program_id(1)

    @pl.when(i == 0)
    def _():
        out_ref[...] = jnp.zeros_like(out_ref)

    pr = pr_ref[...].astype(jnp.float32)
    gt = gt_ref[...].astype(jnp.float32)

    if needs_mask:
        # Logical block index (the index_map may have clamped the physical one).
        bidx = pl.program_id(0) * steps + i
        valid = rows - bidx * tm                 # <= 0 for fully-duplicated blocks
        row_ids = jax.lax.broadcasted_iota(jnp.int32, (tm, LANE), 0)
        keep = row_ids < valid
        pr = jnp.where(keep, pr, 0.0)
        gt = jnp.where(keep, gt, 0.0)

    # Reduce tm rows -> 8 rows with vreg-wise adds only (VPU slack slots); the
    # cross-lane/sublane reduction is deferred to the wrapper.
    inter = jnp.sum((pr * gt).reshape(-1, 8, LANE), axis=0)
    sums = jnp.sum((pr + gt).reshape(-1, 8, LANE), axis=0)
    out_ref[0, 0] += inter
    out_ref[0, 1] += sums


@jax.jit
def dice_loss_pallas(pr, gt, smooth=1.0):
    """Dice loss. pr and gt may be any float/integer/bool dtype (bf16 predictions
    and int8/bool masks are recommended to halve/quarter HBM traffic); the kernel
    casts to f32 internally."""
    assert pr.shape == gt.shape, "Predictions and ground truth must have the same shape."
    total = int(pr.size)
    assert total > 0

    pr_f = jnp.ravel(pr)
    gt_f = jnp.ravel(gt)

    rows = pl.cdiv(total, LANE)
    if total != rows * LANE:
        # TODO(synk): a sub-128 ragged tail still forces one full-array pad copy;
        # segmentation shapes are essentially always 128-aligned so this is rare.
        pad = rows * LANE - total
        pr_f = jnp.pad(pr_f, (0, pad))
        gt_f = jnp.pad(gt_f, (0, pad))
    # Contiguous reshape -> free lane-dense view, no data movement.
    pr2 = pr_f.reshape(rows, LANE)
    gt2 = gt_f.reshape(rows, LANE)

    # Row-tile granularity must respect dtype sublane packing of BOTH inputs.
    g = max(_sublane_granule(pr.dtype), _sublane_granule(gt.dtype))

    # Split across the two v7x TensorCores only if each core gets >= 2 full tiles;
    # on 1-TC chips (v5e/v6e) the extra "parallel" axis is sequential and harmless,
    # and for small/medium inputs ncores=1 keeps the tile as large as possible.
    ncores = 2 if rows >= 4 * TM_MAX else 1

    tm = min(TM_MAX, _round_up(pl.cdiv(rows, ncores), g))
    blocks = pl.cdiv(rows, tm)            # real blocks covering the array
    steps = pl.cdiv(blocks, ncores)       # steps per core (grid is rectangular)
    covered = ncores * steps              # may exceed `blocks` by < ncores
    needs_mask = (blocks * tm != rows) or (covered != blocks)

    if covered == blocks:
        def in_map(c, i):
            return (c * steps + i, 0)
    else:
        last_block = blocks - 1

        def in_map(c, i):
            # Clamp so duplicated trailing blocks DMA in-bounds data; their
            # contribution is masked to zero inside the kernel.
            return (jnp.minimum(c * steps + i, last_block), 0)

    kernel = functools.partial(
        _dice_kernel, tm=tm, steps=steps, rows=rows, needs_mask=needs_mask)

    bytes_accessed = (pr.size * jnp.dtype(pr.dtype).itemsize
                      + gt.size * jnp.dtype(gt.dtype).itemsize)

    partials = pl.pallas_call(
        kernel,
        out_shape=jax.ShapeDtypeStruct((ncores, 2, 8, LANE), jnp.float32),
        grid_spec=pltpu.PrefetchScalarGridSpec(
            num_scalar_prefetch=0,
            grid=(ncores, steps),
            in_specs=[
                pl.BlockSpec((tm, LANE), in_map),
                pl.BlockSpec((tm, LANE), in_map),
            ],
            out_specs=pl.BlockSpec((1, 2, 8, LANE), lambda c, i: (c, 0, 0, 0)),
        ),
        compiler_params=pltpu.CompilerParams(
            dimension_semantics=("parallel", "arbitrary"),
            vmem_limit_bytes=32 * 1024 * 1024,
        ),
        cost_estimate=pl.CostEstimate(
            flops=3 * total, transcendentals=0, bytes_accessed=int(bytes_accessed)),
    )(pr2, gt2)

    intersection = jnp.sum(partials[:, 0])
    denom = jnp.sum(partials[:, 1])
    smooth = jnp.float32(smooth)
    return 1.0 - (2.0 * intersection + smooth) / (denom + smooth)


def dice_loss_ref(pr, gt, smooth=1.0):
    pr_flat = jnp.ravel(pr).astype(jnp.float32)
    gt_flat = jnp.ravel(gt).astype(jnp.float32)
    intersection = jnp.sum(pr_flat * gt_flat)
    return 1.0 - (2.0 * intersection + smooth) / (jnp.sum(pr_flat) + jnp.sum(gt_flat) + smooth)


if __name__ == "__main__":
    key = jax.random.PRNGKey(0)
    k1, k2, k3, k4, k5, k6, k7, k8 = jax.random.split(key, 8)

    # Primary test: NCHW segmentation-style input (total % 128 == 0 -> zero-copy path).
    B, C, H, W = 2, 4, 16, 16
    pr = jax.random.uniform(k1, (B, C, H, W), dtype=jnp.float32)
    gt = (jax.random.uniform(k2, (B, C, H, W), dtype=jnp.float32) > 0.5).astype(jnp.float32)

    # Host-side validity check mirroring the torch assert (outside the kernel).
    # TODO(synk): the torch runtime assert on gt in {0,1} has no in-kernel equivalent.
    assert bool(jnp.all((gt == 0.0) | (gt == 1.0))), "Ground truth labels must be 0 or 1."

    loss = jax.block_until_ready(dice_loss_pallas(pr, gt))
    ref = dice_loss_ref(pr, gt)
    assert jnp.allclose(loss, ref, rtol=1e-5, atol=1e-6), (loss, ref)

    # Ragged size (not a multiple of 128) -> rare pad fallback + row masking.
    pr_odd = jax.random.uniform(k3, (3, 5, 7, 11), dtype=jnp.float32)
    gt_odd = (jax.random.uniform(k4, (3, 5, 7, 11), dtype=jnp.float32) > 0.5).astype(jnp.float32)
    loss_odd = jax.block_until_ready(dice_loss_pallas(pr_odd, gt_odd))
    ref_odd = dice_loss_ref(pr_odd, gt_odd)
    assert jnp.allclose(loss_odd, ref_odd, rtol=1e-5, atol=1e-6), (loss_odd, ref_odd)

    # Narrow-dtype predictions (bf16) with f32 mask: exercises the in-kernel cast
    # and the sublane-granule-aware tiling.
    pr_bf = jax.random.uniform(k5, (2, 3, 40, 40), dtype=jnp.float32).astype(jnp.bfloat16)
    gt_bf = (jax.random.uniform(k6, (2, 3, 40, 40), dtype=jnp.float32) > 0.5).astype(jnp.float32)
    loss_bf = jax.block_until_ready(dice_loss_pallas(pr_bf, gt_bf))
    ref_bf = dice_loss_ref(pr_bf, gt_bf)
    assert jnp.allclose(loss_bf, ref_bf, rtol=1e-4, atol=1e-5), (loss_bf, ref_bf)

    # Larger input: multi-step grid, dual-core split, clamped duplicate block and
    # partial-block masking all in one go.
    pr_big = jax.random.uniform(k7, (1, 4, 512, 520), dtype=jnp.float32)
    gt_big = (jax.random.uniform(k8, (1, 4, 512, 520), dtype=jnp.float32) > 0.5).astype(jnp.float32)
    loss_big = jax.block_until_ready(dice_loss_pallas(pr_big, gt_big))
    ref_big = dice_loss_ref(pr_big, gt_big)
    assert jnp.allclose(loss_big, ref_big, rtol=1e-4, atol=1e-5), (loss_big, ref_big)

    print("KERNEL_OK")
</pallas_src>

<mosaic_0001>
module attributes {stable_mosaic.version = 11 : i64} {
  func.func @_dice_kernel(%arg0: i32, %arg1: i32, %arg2: memref<16x128xf32, #tpu.memory_space<vmem>>, %arg3: memref<16x128xf32, #tpu.memory_space<vmem>>, %arg4: memref<1x2x8x128xf32, #tpu.memory_space<vmem>>) attributes {dimension_semantics = [#tpu.dimension_semantics<parallel>, #tpu.dimension_semantics<arbitrary>], iteration_bounds = array<i64: 1, 1>, scalar_prefetch = 0 : i64, scratch_operands = 0 : i64, tpu.core_type = #tpu.core_type<tc>, window_params = [{transform_indices = @transform_0, window_bounds = array<i64: 16, 128>}, {transform_indices = @transform_1, window_bounds = array<i64: 16, 128>}, {transform_indices = @transform_2, window_bounds = array<i64: 1, 2, 8, 128>}]} {
    %c0_i32 = arith.constant 0 : i32
    %0 = arith.cmpi eq, %arg1, %c0_i32 : i32
    %1 = arith.extui %0 : i1 to i32
    %c0_i32_0 = arith.constant 0 : i32
    %2 = arith.cmpi ne, %1, %c0_i32_0 : i32
    scf.if %2 {
      %cst_20 = arith.constant 0.000000e+00 : f32
      %23 = vector.broadcast %cst_20 : f32 to vector<1x2x8x128xf32>
      %c0_21 = arith.constant 0 : index
      %c0_22 = arith.constant 0 : index
      %c0_23 = arith.constant 0 : index
      %c0_24 = arith.constant 0 : index
      %24 = vector.load %arg4[%c0_21, %c0_22, %c0_23, %c0_24] : memref<1x2x8x128xf32, #tpu.memory_space<vmem>>, vector<1x2x8x128xf32>
      tpu.vector_store %arg4[%c0_21, %c0_22, %c0_23, %c0_24], %23 {strides = array<i32>} : memref<1x2x8x128xf32, #tpu.memory_space<vmem>>, vector<1x2x8x128xf32>,
    } else {
    }
    %c0 = arith.constant 0 : index
    %c0_1 = arith.constant 0 : index
    %3 = vector.load %arg2[%c0, %c0_1] : memref<16x128xf32, #tpu.memory_space<vmem>>, vector<16x128xf32>
    %c0_2 = arith.constant 0 : index
    %c0_3 = arith.constant 0 : index
    %4 = vector.load %arg3[%c0_2, %c0_3] : memref<16x128xf32, #tpu.memory_space<vmem>>, vector<16x128xf32>
    %5 = arith.mulf %3, %4 : vector<16x128xf32>
    %6 = vector.shape_cast %5 : vector<16x128xf32> to vector<2x8x128xf32>
    %cst = arith.constant dense<0.000000e+00> : vector<8x128xf32>
    %7 = vector.multi_reduction <add>, %6, %cst [0] : vector<2x8x128xf32> to vector<8x128xf32>
    %8 = arith.addf %3, %4 : vector<16x128xf32>
    %9 = vector.shape_cast %8 : vector<16x128xf32> to vector<2x8x128xf32>
    %cst_4 = arith.constant dense<0.000000e+00> : vector<8x128xf32>
    %10 = vector.multi_reduction <add>, %9, %cst_4 [0] : vector<2x8x128xf32> to vector<8x128xf32>
    %c0_5 = arith.constant 0 : index
    %c0_6 = arith.constant 0 : index
    %c0_7 = arith.constant 0 : index
    %c0_8 = arith.constant 0 : index
    %11 = vector.load %arg4[%c0_5, %c0_6, %c0_7, %c0_8] : memref<1x2x8x128xf32, #tpu.memory_space<vmem>>, vector<1x1x8x128xf32>
    %12 = vector.shape_cast %11 : vector<1x1x8x128xf32> to vector<8x128xf32>
    %13 = arith.addf %12, %7 : vector<8x128xf32>
    %c0_9 = arith.constant 0 : index
    %c0_10 = arith.constant 0 : index
    %c0_11 = arith.constant 0 : index
    %c0_12 = arith.constant 0 : index
    %14 = vector.load %arg4[%c0_9, %c0_10, %c0_11, %c0_12] : memref<1x2x8x128xf32, #tpu.memory_space<vmem>>, vector<1x1x8x128xf32>
    %15 = vector.shape_cast %14 : vector<1x1x8x128xf32> to vector<8x128xf32>
    %16 = vector.shape_cast %13 : vector<8x128xf32> to vector<1x1x8x128xf32>
    tpu.vector_store %arg4[%c0_9, %c0_10, %c0_11, %c0_12], %16 {strides = array<i32>} : memref<1x2x8x128xf32, #tpu.memory_space<vmem>>, vector<1x1x8x128xf32>,
    %c0_13 = arith.constant 0 : index
    %c1 = arith.constant 1 : index
    %c0_14 = arith.constant 0 : index
    %c0_15 = arith.constant 0 : index
    %17 = vector.load %arg4[%c0_13, %c1, %c0_14, %c0_15] : memref<1x2x8x128xf32, #tpu.memory_space<vmem>>, vector<1x1x8x128xf32>
    %18 = vector.shape_cast %17 : vector<1x1x8x128xf32> to vector<8x128xf32>
    %19 = arith.addf %18, %10 : vector<8x128xf32>
    %c0_16 = arith.constant 0 : index
    %c1_17 = arith.constant 1 : index
    %c0_18 = arith.constant 0 : index
    %c0_19 = arith.constant 0 : index
    %20 = vector.load %arg4[%c0_16, %c1_17, %c0_18, %c0_19] : memref<1x2x8x128xf32, #tpu.memory_space<vmem>>, vector<1x1x8x128xf32>
    %21 = vector.shape_cast %20 : vector<1x1x8x128xf32> to vector<8x128xf32>
    %22 = vector.shape_cast %19 : vector<8x128xf32> to vector<1x1x8x128xf32>
    tpu.vector_store %arg4[%c0_16, %c1_17, %c0_18, %c0_19], %22 {strides = array<i32>} : memref<1x2x8x128xf32, #tpu.memory_space<vmem>>, vector<1x1x8x128xf32>,
    return
  }
  func.func @transform_0(%arg0: i32, %arg1: i32) -> (i32, i32) {
    %c1_i32 = arith.constant 1 : i32
    %0 = arith.muli %arg0, %c1_i32 : i32
    %1 = arith.addi %0, %arg1 : i32
    %c0_i32 = arith.constant 0 : i32
    %c0_i32_0 = arith.constant 0 : i32
    return %1, %c0_i32 : i32, i32
  }
  func.func @transform_1(%arg0: i32, %arg1: i32) -> (i32, i32) {
    %c1_i32 = arith.constant 1 : i32
    %0 = arith.muli %arg0, %c1_i32 : i32
    %1 = arith.addi %0, %arg1 : i32
    %c0_i32 = arith.constant 0 : i32
    %c0_i32_0 = arith.constant 0 : i32
    return %1, %c0_i32 : i32, i32
  }
  func.func @transform_2(%arg0: i32, %arg1: i32) -> (i32, i32, i32, i32) {
    %c0_i32 = arith.constant 0 : i32
    %c0_i32_0 = arith.constant 0 : i32
    %c0_i32_1 = arith.constant 0 : i32
    %c0_i32_2 = arith.constant 0 : i32
    return %arg0, %c0_i32, %c0_i32_0, %c0_i32_1 : i32, i32, i32, i32
  }
}

</mosaic_0001>

<bundles_post_ra>
// kernel: dice_loss_pallas.1
= control target key start
LH: loop header
LB: loop body
LE: loop exit
PB: predicated region body
PF: predicated region fallthrough
CT: control target
= control target key end

     0   :  { %s130_s0 = inlined_call_operand.vmem [shape: f32[16,128], index: 0, kind: input, shape index: {}]   ;;  %s131_s1 = inlined_call_operand.vmem [shape: f32[16,128], index: 1, kind: input, shape index: {}]   ;;  %s132_s2 = inlined_call_operand.vmem [shape: f32[1,2,8,128], index: 2, kind: output, shape index: {}]  }
   0x1   :  { %v61_v0 = vld [vmem:[%s130_s0] sm:$0xff]  ;;  %v62_v1 = vld [vmem:[%s130_s0 + $0x8] sm:$0xff] }
   0x2   :  { %v63_v2 = vld [vmem:[%s131_s1] sm:$0xff]  ;;  %v64_v3 = vld [vmem:[%s131_s1 + $0x8] sm:$0xff] }
   0x3   :  { %v65_v4 = vmul.f32 %v63_v2, %v61_v0  ;;  %v68_v5 = vadd.f32 %v63_v2, %v61_v0  ;;  %v66_v6 = vmul.f32 %v64_v3, %v62_v1  ;;  %v69_v7 = vadd.f32 %v64_v3, %v62_v1 }
   0x5   :  { %v67_v8 = vadd.f32 %v66_v6, %v65_v4  ;;  %v70_v9 = vadd.f32 %v69_v7, %v68_v5 }
   0x7   :  { %73 = vst [vmem:[%s132_s2] sm:$0xff] %v67_v8  ;;  %95 = vst [vmem:[%s132_s2 + $0x8] sm:$0xff] %v70_v9 }

</bundles_post_ra>
